<compile_context>
chip_gen: v7x
topology: tpu7x:2x2x1
jax: 0.10.0
libtpu: 0.0.40
codegen_flags: <defaults>
</compile_context>

<pallas_src>
import functools

import jax
import jax.numpy as jnp
from jax import lax
from jax.experimental import pallas as pl
from jax.experimental.pallas import tpu as pltpu

LANES = 128
SUBLANES = 8
MAX_TILE_ROWS = 2048     # up to 1 MiB f32 / 512 KiB bf16 per streamed input block
PAD_MAG = 1e30           # softplus(sign * (+/-PAD_MAG)) == 0.0 exactly in f32


def _softplus(z):
    # Stable softplus: exp/log1p go to the EUP slot, max/abs/neg/add to the VPU.
    return jnp.maximum(z, 0.0) + jnp.log1p(jnp.exp(-jnp.abs(z)))


def _triple_bce_kernel(real_ref, fake_ref, hal_ref, out_ref, acc_ref, *,
                       segs, num_steps, acc_rows):
    t = pl.program_id(0)

    @pl.when(t == 0)
    def _init():
        acc_ref[...] = jnp.zeros_like(acc_ref)

    # segs: per segment (t0, n_tiles, tile_rows, last_rows, sign, inv_n) -- all static.
    for ref, seg in zip((real_ref, fake_ref, hal_ref), segs):
        t0, n_tiles, tile_rows, last_rows, sign, inv_n = seg
        local = t - t0
        in_seg = (t >= t0) & (t < t0 + n_tiles)

        def _accumulate(masked, ref=ref, tile_rows=tile_rows,
                        last_rows=last_rows, sign=sign, inv_n=inv_n):
            x = ref[...].astype(jnp.float32)          # native-dtype DMA, upcast in-kernel
            z = -x if sign < 0.0 else x               # real -> softplus(-x); else softplus(x)
            sp = _softplus(z)
            if masked:
                # Boundary tile only: rows >= last_rows are out-of-bounds garbage.
                row = lax.broadcasted_iota(jnp.int32, (tile_rows, LANES), 0)
                sp = jnp.where(row < last_rows, sp, 0.0)
            contrib = sp * inv_n                      # fold the mean's 1/n per segment
            if tile_rows == acc_rows:
                acc_ref[...] += contrib
            else:
                acc_ref[0:tile_rows, :] += contrib

        if last_rows == tile_rows:
            # Every tile of this segment is full: unmasked fast path only.
            @pl.when(in_seg)
            def _full():
                _accumulate(False)
        else:
            @pl.when(in_seg & (local < n_tiles - 1))
            def _interior():
                _accumulate(False)

            @pl.when(in_seg & (local == n_tiles - 1))
            def _boundary():
                _accumulate(True)

    @pl.when(t == num_steps - 1)
    def _finalize():
        out_ref[...] = jnp.full((SUBLANES, LANES), jnp.sum(acc_ref[...]),
                                dtype=jnp.float32)


@jax.jit
def triple_adversarial_loss(real_pred, fake_pred, halluc_pred):
    preds = (real_pred, fake_pred, halluc_pred)
    signs = (-1.0, 1.0, 1.0)    # real -> softplus(-x); fake / halluc -> softplus(x)
    sizes = tuple(int(p.size) for p in preds)
    if any(s == 0 for s in sizes):
        # PyTorch's BCEWithLogitsLoss would return NaN on an empty tensor; be explicit.
        raise ValueError("TripleAdversarialLoss: predictions must be non-empty.")

    inputs, in_specs, segs = [], [], []
    t0 = 0
    acc_rows = 1
    for p, sign, n in zip(preds, signs, sizes):
        flat = jnp.ravel(p)                           # free reshape for contiguous input
        rem = n % LANES
        if rem:
            # <=127-element pad so the lane-dense reshape is legal; pad value chosen so
            # softplus(sign * pad) == 0 exactly -> no lane masking needed in the kernel.
            # TODO(synk): a fully copy-free path for large non-128-multiple tensors
            # would keep them in HBM (memory_space=pl.ANY) and DMA the ragged tail
            # manually; this pad re-materializes only that one tensor once.
            pad_val = PAD_MAG if sign < 0.0 else -PAD_MAG
            flat = jnp.pad(flat, (0, LANES - rem), constant_values=pad_val)
        rows = flat.size // LANES
        tile_rows = rows if rows <= MAX_TILE_ROWS else MAX_TILE_ROWS
        n_tiles = pl.cdiv(rows, tile_rows)
        last_rows = rows - (n_tiles - 1) * tile_rows  # rows valid in the final tile

        inputs.append(flat.reshape(rows, LANES))
        in_specs.append(pl.BlockSpec(
            (tile_rows, LANES),
            # Clamp to this segment's tile range: outside it the block index is
            # constant, so the pipeline does not re-fetch the block (~1x HBM reads).
            lambda t, t0=t0, hi=n_tiles - 1: (
                jnp.minimum(jnp.maximum(t - t0, 0), hi), 0)))
        segs.append((t0, n_tiles, tile_rows, last_rows, sign, 1.0 / n))
        acc_rows = max(acc_rows, tile_rows)
        t0 += n_tiles

    num_steps = t0
    kernel = functools.partial(_triple_bce_kernel, segs=tuple(segs),
                               num_steps=num_steps, acc_rows=acc_rows)

    out = pl.pallas_call(
        kernel,
        out_shape=jax.ShapeDtypeStruct((SUBLANES, LANES), jnp.float32),
        grid_spec=pltpu.PrefetchScalarGridSpec(
            num_scalar_prefetch=0,
            grid=(num_steps,),
            in_specs=in_specs,
            out_specs=pl.BlockSpec((SUBLANES, LANES), lambda t: (0, 0)),
            scratch_shapes=[pltpu.VMEM((acc_rows, LANES), jnp.float32)]),
        # TODO(synk): on v7x (2 TensorCores) add a leading "parallel" core axis with
        # per-core partial outputs, and/or pipeline_mode=pl.Buffered(3) on the inputs
        # if the per-step DMA is exposed; v5e/v6e have a single core so a plain
        # reduction grid is optimal there.
        compiler_params=pltpu.CompilerParams(
            dimension_semantics=("arbitrary",),
            vmem_limit_bytes=32 * 1024 * 1024),
    )(*inputs)
    return out[0, 0]


def _reference(real_pred, fake_pred, halluc_pred):
    def bce_mean(x, sign):
        z = sign * x.astype(jnp.float32)
        return jnp.mean(jnp.maximum(z, 0.0) + jnp.log1p(jnp.exp(-jnp.abs(z))))
    return (bce_mean(real_pred, -1.0) + bce_mean(fake_pred, 1.0)
            + bce_mean(halluc_pred, 1.0))


if __name__ == "__main__":
    key = jax.random.PRNGKey(0)
    keys = jax.random.split(key, 9)

    # 1) Patch-discriminator logits in NCHW: [batch=2, channels=1, 16, 16] (128-aligned).
    real_pred = jax.random.normal(keys[0], (2, 1, 16, 16), dtype=jnp.float32)
    fake_pred = jax.random.normal(keys[1], (2, 1, 16, 16), dtype=jnp.float32)
    halluc_pred = jax.random.normal(keys[2], (2, 1, 16, 16), dtype=jnp.float32)
    loss = triple_adversarial_loss(real_pred, fake_pred, halluc_pred)
    jax.block_until_ready(loss)
    ref = _reference(real_pred, fake_pred, halluc_pred)
    assert jnp.allclose(loss, ref, rtol=1e-5, atol=1e-5), (loss, ref)

    # 2) Mismatched, non-multiple-of-128 sizes + bf16 ingest: exercises the +/-PAD_MAG
    #    lane-tail padding, per-tensor tile sizes, and the sliced-accumulator path.
    real2 = jax.random.normal(keys[3], (2, 1, 12, 12), dtype=jnp.bfloat16)
    fake2 = jax.random.normal(keys[4], (1, 1, 30, 30), dtype=jnp.bfloat16)
    hal2 = jax.random.normal(keys[5], (2, 1, 16, 16), dtype=jnp.bfloat16)
    loss2 = triple_adversarial_loss(real2, fake2, hal2)
    jax.block_until_ready(loss2)
    ref2 = _reference(real2, fake2, hal2)
    assert jnp.allclose(loss2, ref2, rtol=1e-4, atol=1e-4), (loss2, ref2)

    # 3) One tensor larger than a tile (2304 rows -> 2048 + partial 256): exercises the
    #    multi-tile streaming path and the masked boundary tile.
    real3 = jax.random.normal(keys[6], (2, 1, 384, 384), dtype=jnp.float32)
    fake3 = jax.random.normal(keys[7], (2, 1, 16, 16), dtype=jnp.float32)
    hal3 = jax.random.normal(keys[8], (1, 1, 20, 20), dtype=jnp.float32)
    loss3 = triple_adversarial_loss(real3, fake3, hal3)
    jax.block_until_ready(loss3)
    ref3 = _reference(real3, fake3, hal3)
    assert jnp.allclose(loss3, ref3, rtol=5e-4, atol=5e-4), (loss3, ref3)

    print("KERNEL_OK")
</pallas_src>

<mosaic_0001>
module attributes {stable_mosaic.version = 11 : i64} {
  func.func @_triple_bce_kernel(%arg0: i32, %arg1: memref<4x128xf32, #tpu.memory_space<vmem>>, %arg2: memref<4x128xf32, #tpu.memory_space<vmem>>, %arg3: memref<4x128xf32, #tpu.memory_space<vmem>>, %arg4: memref<8x128xf32, #tpu.memory_space<vmem>>, %arg5: memref<4x128xf32, #tpu.memory_space<vmem>>) attributes {dimension_semantics = [#tpu.dimension_semantics<arbitrary>], iteration_bounds = array<i64: 3>, scalar_prefetch = 0 : i64, scratch_operands = 1 : i64, tpu.core_type = #tpu.core_type<tc>, window_params = [{transform_indices = @transform_0, window_bounds = array<i64: 4, 128>}, {transform_indices = @transform_1, window_bounds = array<i64: 4, 128>}, {transform_indices = @transform_2, window_bounds = array<i64: 4, 128>}, {pipeline_mode = #tpu.pipeline_mode<synchronous>, transform_indices = @transform_3, window_bounds = array<i64: 8, 128>}]} {
    %c0_i32 = arith.constant 0 : i32
    %0 = arith.cmpi eq, %arg0, %c0_i32 : i32
    %1 = arith.extui %0 : i1 to i32
    %c0_i32_0 = arith.constant 0 : i32
    %2 = arith.cmpi ne, %1, %c0_i32_0 : i32
    scf.if %2 {
      %cst = arith.constant 0.000000e+00 : f32
      %21 = vector.broadcast %cst : f32 to vector<4x128xf32>
      %c0 = arith.constant 0 : index
      %c0_9 = arith.constant 0 : index
      %22 = vector.load %arg5[%c0, %c0_9] : memref<4x128xf32, #tpu.memory_space<vmem>>, vector<4x128xf32>
      tpu.vector_store %arg5[%c0, %c0_9], %21 {strides = array<i32>} : memref<4x128xf32, #tpu.memory_space<vmem>>, vector<4x128xf32>,
    } else {
    }
    %c0_i32_1 = arith.constant 0 : i32
    %3 = arith.cmpi sge, %arg0, %c0_i32_1 : i32
    %c1_i32 = arith.constant 1 : i32
    %4 = arith.cmpi slt, %arg0, %c1_i32 : i32
    %5 = arith.andi %3, %4 : i1
    %6 = arith.extui %5 : i1 to i32
    %c0_i32_2 = arith.constant 0 : i32
    %7 = arith.cmpi ne, %6, %c0_i32_2 : i32
    scf.if %7 {
      %c0 = arith.constant 0 : index
      %c0_9 = arith.constant 0 : index
      %21 = vector.load %arg1[%c0, %c0_9] : memref<4x128xf32, #tpu.memory_space<vmem>>, vector<4x128xf32>
      %cst = arith.constant 0.000000e+00 : f32
      %22 = vector.broadcast %cst : f32 to vector<4x128xf32>
      %23 = arith.subf %22, %21 : vector<4x128xf32>
      %cst_10 = arith.constant 0.000000e+00 : f32
      %24 = vector.broadcast %cst_10 : f32 to vector<4x128xf32>
      %25 = arith.maximumf %23, %24 : vector<4x128xf32>
      %26 = math.absf %23 : vector<4x128xf32>
      %cst_11 = arith.constant 0.000000e+00 : f32
      %27 = vector.broadcast %cst_11 : f32 to vector<4x128xf32>
      %28 = arith.subf %27, %26 : vector<4x128xf32>
      %29 = math.exp %28 : vector<4x128xf32>
      %30 = math.log1p %29 : vector<4x128xf32>
      %31 = arith.addf %25, %30 : vector<4x128xf32>
      %cst_12 = arith.constant 0.001953125 : f32
      %32 = vector.broadcast %cst_12 : f32 to vector<4x128xf32>
      %33 = arith.mulf %31, %32 : vector<4x128xf32>
      %c0_13 = arith.constant 0 : index
      %c0_14 = arith.constant 0 : index
      %34 = vector.load %arg5[%c0_13, %c0_14] : memref<4x128xf32, #tpu.memory_space<vmem>>, vector<4x128xf32>
      %35 = arith.addf %34, %33 : vector<4x128xf32>
      %c0_15 = arith.constant 0 : index
      %c0_16 = arith.constant 0 : index
      %36 = vector.load %arg5[%c0_15, %c0_16] : memref<4x128xf32, #tpu.memory_space<vmem>>, vector<4x128xf32>
      tpu.vector_store %arg5[%c0_15, %c0_16], %35 {strides = array<i32>} : memref<4x128xf32, #tpu.memory_space<vmem>>, vector<4x128xf32>,
    } else {
    }
    %c1_i32_3 = arith.constant 1 : i32
    %8 = arith.cmpi sge, %arg0, %c1_i32_3 : i32
    %c2_i32 = arith.constant 2 : i32
    %9 = arith.cmpi slt, %arg0, %c2_i32 : i32
    %10 = arith.andi %8, %9 : i1
    %11 = arith.extui %10 : i1 to i32
    %c0_i32_4 = arith.constant 0 : i32
    %12 = arith.cmpi ne, %11, %c0_i32_4 : i32
    scf.if %12 {
      %c0 = arith.constant 0 : index
      %c0_9 = arith.constant 0 : index
      %21 = vector.load %arg2[%c0, %c0_9] : memref<4x128xf32, #tpu.memory_space<vmem>>, vector<4x128xf32>
      %cst = arith.constant 0.000000e+00 : f32
      %22 = vector.broadcast %cst : f32 to vector<4x128xf32>
      %23 = arith.maximumf %21, %22 : vector<4x128xf32>
      %24 = math.absf %21 : vector<4x128xf32>
      %cst_10 = arith.constant 0.000000e+00 : f32
      %25 = vector.broadcast %cst_10 : f32 to vector<4x128xf32>
      %26 = arith.subf %25, %24 : vector<4x128xf32>
      %27 = math.exp %26 : vector<4x128xf32>
      %28 = math.log1p %27 : vector<4x128xf32>
      %29 = arith.addf %23, %28 : vector<4x128xf32>
      %cst_11 = arith.constant 0.001953125 : f32
      %30 = vector.broadcast %cst_11 : f32 to vector<4x128xf32>
      %31 = arith.mulf %29, %30 : vector<4x128xf32>
      %c0_12 = arith.constant 0 : index
      %c0_13 = arith.constant 0 : index
      %32 = vector.load %arg5[%c0_12, %c0_13] : memref<4x128xf32, #tpu.memory_space<vmem>>, vector<4x128xf32>
      %33 = arith.addf %32, %31 : vector<4x128xf32>
      %c0_14 = arith.constant 0 : index
      %c0_15 = arith.constant 0 : index
      %34 = vector.load %arg5[%c0_14, %c0_15] : memref<4x128xf32, #tpu.memory_space<vmem>>, vector<4x128xf32>
      tpu.vector_store %arg5[%c0_14, %c0_15], %33 {strides = array<i32>} : memref<4x128xf32, #tpu.memory_space<vmem>>, vector<4x128xf32>,
    } else {
    }
    %c2_i32_5 = arith.constant 2 : i32
    %13 = arith.cmpi sge, %arg0, %c2_i32_5 : i32
    %c3_i32 = arith.constant 3 : i32
    %14 = arith.cmpi slt, %arg0, %c3_i32 : i32
    %15 = arith.andi %13, %14 : i1
    %16 = arith.extui %15 : i1 to i32
    %c0_i32_6 = arith.constant 0 : i32
    %17 = arith.cmpi ne, %16, %c0_i32_6 : i32
    scf.if %17 {
      %c0 = arith.constant 0 : index
      %c0_9 = arith.constant 0 : index
      %21 = vector.load %arg3[%c0, %c0_9] : memref<4x128xf32, #tpu.memory_space<vmem>>, vector<4x128xf32>
      %cst = arith.constant 0.000000e+00 : f32
      %22 = vector.broadcast %cst : f32 to vector<4x128xf32>
      %23 = arith.maximumf %21, %22 : vector<4x128xf32>
      %24 = math.absf %21 : vector<4x128xf32>
      %cst_10 = arith.constant 0.000000e+00 : f32
      %25 = vector.broadcast %cst_10 : f32 to vector<4x128xf32>
      %26 = arith.subf %25, %24 : vector<4x128xf32>
      %27 = math.exp %26 : vector<4x128xf32>
      %28 = math.log1p %27 : vector<4x128xf32>
      %29 = arith.addf %23, %28 : vector<4x128xf32>
      %cst_11 = arith.constant 0.001953125 : f32
      %30 = vector.broadcast %cst_11 : f32 to vector<4x128xf32>
      %31 = arith.mulf %29, %30 : vector<4x128xf32>
      %c0_12 = arith.constant 0 : index
      %c0_13 = arith.constant 0 : index
      %32 = vector.load %arg5[%c0_12, %c0_13] : memref<4x128xf32, #tpu.memory_space<vmem>>, vector<4x128xf32>
      %33 = arith.addf %32, %31 : vector<4x128xf32>
      %c0_14 = arith.constant 0 : index
      %c0_15 = arith.constant 0 : index
      %34 = vector.load %arg5[%c0_14, %c0_15] : memref<4x128xf32, #tpu.memory_space<vmem>>, vector<4x128xf32>
      tpu.vector_store %arg5[%c0_14, %c0_15], %33 {strides = array<i32>} : memref<4x128xf32, #tpu.memory_space<vmem>>, vector<4x128xf32>,
    } else {
    }
    %c2_i32_7 = arith.constant 2 : i32
    %18 = arith.cmpi eq, %arg0, %c2_i32_7 : i32
    %19 = arith.extui %18 : i1 to i32
    %c0_i32_8 = arith.constant 0 : i32
    %20 = arith.cmpi ne, %19, %c0_i32_8 : i32
    scf.if %20 {
      %c0 = arith.constant 0 : index
      %c0_9 = arith.constant 0 : index
      %21 = vector.load %arg5[%c0, %c0_9] : memref<4x128xf32, #tpu.memory_space<vmem>>, vector<4x128xf32>
      %22 = vector.shape_cast %21 : vector<4x128xf32> to vector<1x4x128xf32>
      %cst = arith.constant dense<0.000000e+00> : vector<1xf32>
      %23 = vector.multi_reduction <add>, %22, %cst [1, 2] : vector<1x4x128xf32> to vector<1xf32>
      %24 = vector.shape_cast %23 : vector<1xf32> to vector<1x1x1xf32>
      %25 = vector.extract %24[0, 0, 0] : f32 from vector<1x1x1xf32>
      %26 = vector.broadcast %25 : f32 to vector<8x128xf32>
      %c0_10 = arith.constant 0 : index
      %c0_11 = arith.constant 0 : index
      %27 = vector.load %arg4[%c0_10, %c0_11] : memref<8x128xf32, #tpu.memory_space<vmem>>, vector<8x128xf32>
      tpu.vector_store %arg4[%c0_10, %c0_11], %26 {strides = array<i32>} : memref<8x128xf32, #tpu.memory_space<vmem>>, vector<8x128xf32>,
    } else {
    }
    return
  }
  func.func @transform_0(%arg0: i32) -> (i32, i32) {
    %c0_i32 = arith.constant 0 : i32
    %0 = arith.subi %arg0, %c0_i32 : i32
    %c0_i32_0 = arith.constant 0 : i32
    %1 = arith.maxsi %0, %c0_i32_0 : i32
    %c0_i32_1 = arith.constant 0 : i32
    %2 = arith.minsi %1, %c0_i32_1 : i32
    %c0_i32_2 = arith.constant 0 : i32
    %c0_i32_3 = arith.constant 0 : i32
    return %2, %c0_i32_2 : i32, i32
  }
  func.func @transform_1(%arg0: i32) -> (i32, i32) {
    %c1_i32 = arith.constant 1 : i32
    %0 = arith.subi %arg0, %c1_i32 : i32
    %c0_i32 = arith.constant 0 : i32
    %1 = arith.maxsi %0, %c0_i32 : i32
    %c0_i32_0 = arith.constant 0 : i32
    %2 = arith.minsi %1, %c0_i32_0 : i32
    %c0_i32_1 = arith.constant 0 : i32
    %c0_i32_2 = arith.constant 0 : i32
    return %2, %c0_i32_1 : i32, i32
  }
  func.func @transform_2(%arg0: i32) -> (i32, i32) {
    %c2_i32 = arith.constant 2 : i32
    %0 = arith.subi %arg0, %c2_i32 : i32
    %c0_i32 = arith.constant 0 : i32
    %1 = arith.maxsi %0, %c0_i32 : i32
    %c0_i32_0 = arith.constant 0 : i32
    %2 = arith.minsi %1, %c0_i32_0 : i32
    %c0_i32_1 = arith.constant 0 : i32
    %c0_i32_2 = arith.constant 0 : i32
    return %2, %c0_i32_1 : i32, i32
  }
  func.func @transform_3(%arg0: i32) -> (i32, i32) {
    %c0_i32 = arith.constant 0 : i32
    %c0_i32_0 = arith.constant 0 : i32
    %c0_i32_1 = arith.constant 0 : i32
    return %c0_i32, %c0_i32_0 : i32, i32
  }
}

</mosaic_0001>

<bundles_post_ra>
// kernel: triple_adversarial_loss.1
= control target key start
LH: loop header
LB: loop body
LE: loop exit
PB: predicated region body
PF: predicated region fallthrough
CT: control target
= control target key end

     0   :  { %s553_s12 = smov 0   ;;  %s586_s0 = inlined_call_operand.vmem [shape: f32[4,128], index: 0, kind: input, shape index: {}]   ;;  %s587_s1 = inlined_call_operand.vmem [shape: f32[4,128], index: 1, kind: input, shape index: {}]   ;;  %s588_s2 = inlined_call_operand.vmem [shape: f32[4,128], index: 2, kind: input, shape index: {}]   ;;  %s589_s3 = inlined_call_operand.vmem [shape: f32[8,128], index: 3, kind: output, shape index: {}]  }
   0x1 LB: > { %s559_s13 = sadd.s32 4294967295, %s530_s12   ;;  %p476_p0 = scmp.ge.s32.totalorder %s530_s12, 1  ;;  %s530_s12 = sphi %s553_s12, %s13_s12  }
   0x2   : > { %p205_p1 = scmp.lt.s32.totalorder %s530_s12, 4 }
   0x4   : > { %p206_p2 = pnand %p476_p0, %p205_p1 }
   0x5   : > { %p497_p3 = scmp.ne.s32.totalorder (!%p206_p2), %s559_s13, 0 }
   0x6   : > { %209 = sbr.rel (%p206_p2) target bundleno = 368 (0x170), region = 32 }
   0xd   : > { %288 = sbr.rel (%p497_p3) target bundleno = 20 (0x14), region = 36  ;;  %v532_v0 = vmov (!%p497_p3), 0.0  }
   0xe   : > { %289 = vst [vmem:[#allocation2] sm:$0xf] (!%p497_p3), %v532_v0 }
  0x14 PF: > { %p290_p4 = scmp.ge.s32.totalorder %s559_s13, 0  ;;  %p291_p5 = scmp.lt.s32.totalorder %s559_s13, 1 }
  0x16   : > { %p292_p6 = pnand %p291_p5, %p290_p4 }
  0x17   : > { %v296_v1 = vld [vmem:[%s586_s0] sm:$0xf] (!%p292_p6) }
  0x18   : > { %295 = sbr.rel (%p292_p6) target bundleno = 66 (0x42), region = 40  ;;  %v297_v2 = vsub.f32 (!%p292_p6), 0.0, %v296_v1  ;;  %v314_v17 = vld [vmem:[#allocation2] sm:$0xf] (!%p292_p6) }
  0x1a   : > { %v299_v3 = vand.u32 (!%p292_p6), 2147483647, %v297_v2  ;;  %v298_v13 = vmax.f32 (!%p292_p6), %v297_v2, 0.0 }
  0x1c   : > { %v300_v4 = vsub.f32 (!%p292_p6), 0.0, %v299_v3 }
  0x1e   : > { %v301_v5 = vmul.f32 (!%p292_p6), 1.442695, %v300_v4 }
  0x20   : > { %512 = vpow2.f32 %v301_v5 }
  0x2a   : > { %v513_v6 = vpop.eup %512 }
  0x2b   : > { %v303_v7 = vadd.f32 1.0, %v513_v6  ;;  %v306_v8 = vmul.f32 -0.5, %v513_v6  ;;  %v309_v10 = vand.u32 2147483647, %v513_v6 }
  0x2d   : > { %514 = vlog2.f32 %v303_v7  ;;  %v307_v9 = vadd.f32 1.0, %v306_v8  ;;  %vm310_vm0 = vcmp.lt.f32.partialorder %v309_v10, 0.0004427343 }
  0x2f   : > { %v308_v11 = vmul.f32 %v513_v6, %v307_v9 }
  0x37   : > { %v515_v12 = vpop.eup %514 }
  0x38   : > { %v305_v14 = vmul.f32 0.6931472, %v515_v12 }
  0x3a   : > { %v311_v15 = vsel %vm310_vm0, %v308_v11, %v305_v14 }
  0x3b   : > { %v312_v16 = vadd.f32 %v311_v15, %v298_v13 }
  0x3d   : > { %v313_v18 = vmul.f32 0.001953125, %v312_v16 }
  0x3f   : > { %v315_v19 = vadd.f32 %v314_v17, %v313_v18 }
  0x41   : > { %316 = vst [vmem:[#allocation2] sm:$0xf] %v315_v19 }
  0x42 PF: > { %p317_p7 = scmp.ge.s32.totalorder %s559_s13, 1  ;;  %p318_p8 = scmp.lt.s32.totalorder %s559_s13, 2 }
  0x44   : > { %p319_p9 = pnand %p318_p8, %p317_p7 }
  0x45   : > { %v323_v20 = vld [vmem:[%s587_s1] sm:$0xf] (!%p319_p9) }
  0x46   : > { %322 = sbr.rel (%p319_p9) target bundleno = 110 (0x6e), region = 44  ;;  %v325_v21 = vand.u32 (!%p319_p9), 2147483647, %v323_v20  ;;  %v324_v31 = vmax.f32 (!%p319_p9), %v323_v20, 0.0 }
  0x48   : > { %v326_v22 = vsub.f32 (!%p319_p9), 0.0, %v325_v21  ;;  %v340_v35 = vld [vmem:[#allocation2] sm:$0xf] (!%p319_p9) }
  0x4a   : > { %v327_v23 = vmul.f32 (!%p319_p9), 1.442695, %v326_v22 }
  0x4c   : > { %516 = vpow2.f32 (!%p319_p9), %v327_v23 }
  0x56   : > { %v517_v24 = vpop.eup %516 }
  0x57   : > { %v329_v25 = vadd.f32 1.0, %v517_v24  ;;  %v332_v26 = vmul.f32 -0.5, %v517_v24  ;;  %v335_v28 = vand.u32 2147483647, %v517_v24 }
  0x59   : > { %518 = vlog2.f32 %v329_v25  ;;  %v333_v27 = vadd.f32 1.0, %v332_v26  ;;  %vm336_vm1 = vcmp.lt.f32.partialorder %v335_v28, 0.0004427343 }
  0x5b   : > { %v334_v29 = vmul.f32 %v517_v24, %v333_v27 }
  0x63   : > { %v519_v30 = vpop.eup %518 }
  0x64   : > { %v331_v32 = vmul.f32 0.6931472, %v519_v30 }
  0x66   : > { %v337_v33 = vsel %vm336_vm1, %v334_v29, %v331_v32 }
  0x67   : > { %v338_v34 = vadd.f32 %v337_v33, %v324_v31 }
  0x69   : > { %v339_v36 = vmul.f32 0.001953125, %v338_v34 }
  0x6b   : > { %v341_v37 = vadd.f32 %v340_v35, %v339_v36 }
  0x6d   : > { %342 = vst [vmem:[#allocation2] sm:$0xf] %v341_v37 }
  0x6e PF: > { %p343_p10 = scmp.ge.s32.totalorder %s559_s13, 2  ;;  %p344_p11 = scmp.lt.s32.totalorder %s559_s13, 3 }
  0x70   : > { %p345_p12 = pnand %p344_p11, %p343_p10 }
  0x71   : > { %v349_v38 = vld [vmem:[%s588_s2] sm:$0xf] (!%p345_p12) }
  0x72   : > { %348 = sbr.rel (%p345_p12) target bundleno = 154 (0x9a), region = 48  ;;  %v351_v39 = vand.u32 (!%p345_p12), 2147483647, %v349_v38  ;;  %v350_v49 = vmax.f32 (!%p345_p12), %v349_v38, 0.0 }
  0x74   : > { %v352_v40 = vsub.f32 (!%p345_p12), 0.0, %v351_v39  ;;  %v366_v53 = vld [vmem:[#allocation2] sm:$0xf] (!%p345_p12) }
  0x76   : > { %v353_v41 = vmul.f32 (!%p345_p12), 1.442695, %v352_v40 }
  0x78   : > { %520 = vpow2.f32 (!%p345_p12), %v353_v41 }
  0x82   : > { %v521_v42 = vpop.eup %520 }
  0x83   : > { %v355_v43 = vadd.f32 1.0, %v521_v42  ;;  %v358_v44 = vmul.f32 -0.5, %v521_v42  ;;  %v361_v46 = vand.u32 2147483647, %v521_v42 }
  0x85   : > { %522 = vlog2.f32 %v355_v43  ;;  %v359_v45 = vadd.f32 1.0, %v358_v44  ;;  %vm362_vm2 = vcmp.lt.f32.partialorder %v361_v46, 0.0004427343 }
  0x87   : > { %v360_v47 = vmul.f32 %v521_v42, %v359_v45 }
  0x8f   : > { %v523_v48 = vpop.eup %522 }
  0x90   : > { %v357_v50 = vmul.f32 0.6931472, %v523_v48 }
  0x92   : > { %v363_v51 = vsel %vm362_vm2, %v360_v47, %v357_v50 }
  0x93   : > { %v364_v52 = vadd.f32 %v363_v51, %v350_v49 }
  0x95   : > { %v365_v54 = vmul.f32 0.001953125, %v364_v52 }
  0x97   : > { %v367_v55 = vadd.f32 %v366_v53, %v365_v54 }
  0x99   : > { %368 = vst [vmem:[#allocation2] sm:$0xf] %v367_v55 }
  0x9a PF: > { %p498_p13 = scmp.ne.s32.totalorder %s559_s13, 2 }
  0x9b   : > { %vm374_vm3 = vcmask (!%p498_p13), 1043456  }
  0x9c   : > { %372 = sbr.rel (%p498_p13) target bundleno = 368 (0x170), region = 52 }
  0xa0   : > { %v373_v56 = vld [vmem:[#allocation2] sm:$0xf] (!%p498_p13) }
  0xa1   : > { %v375_v57 = vsel (!%p498_p13), %vm374_vm3, %v373_v56, 0.0 }
  0xa2   : > { %376 = vadd.xlane.f32.xlu0 (!%p498_p13), %v375_v57 }
 0x12f   : > { %v377_v58 = vpop.xlane.xlu0 %376 }
 0x130   : > { %v378_v59 = vrot.slane %v377_v58, 4 }
 0x132   : > { %v379_v60 = vadd.f32 %v378_v59, %v377_v58 }
 0x134   : > { %v380_v61 = vrot.slane %v379_v60, 2 }
 0x136   : > { %v381_v62 = vadd.f32 %v380_v61, %v379_v60 }
 0x138   : > { %v382_v63 = vrot.slane %v381_v62, 1 }
 0x13a   : > { %v383_v0 = vadd.f32 %v382_v63, %v381_v62 }
 0x13c   : > { %501 = vpush %v383_v0 }
 0x16d   : > { %s502_s20 = spop %501 }
 0x16e   : > { %v385_v1 = vstv %s502_s20 }
 0x16f   : > { %386 = vst [vmem:[%s589_s3] sm:$0xff] %v385_v1 }
 0x170 PF: > { %s13_s12 = sadd.s32 1, %s530_s12  }
 0x171   : > { %p10_p0 = scmp.ge.s32.totalorder %s13_s12, 5  }
 0x173   :  { %12 = sbr.rel (!%p10_p0) target bundleno = 1 (0x1), region = 84 }

</bundles_post_ra>
